<compile_context>
chip_gen: v6e
topology: v6e:2x2x1
jax: 0.10.0
libtpu: 0.0.40
codegen_flags: <defaults>
</compile_context>

<pallas_src>
import functools

import jax
import jax.numpy as jnp
from jax.experimental import pallas as pl
from jax.experimental.pallas import tpu as pltpu

EPS = 1e-5
NCORES = 2                       # leading "parallel" grid axis (v7x megacore split; harmless on 1-TC chips)
_TM_MAX = 4096                   # rows per tile; amortizes ~0.35us/step, VMEM is nowhere near the limit
_VMEM_LIMIT = 32 * 1024 * 1024   # explicit scoped-VMEM limit (safe on v5e/v6e/v7x)
MXU_DTYPE = jnp.bfloat16         # set to jnp.float32 for bit-tight accuracy; bf16 keeps MXU work 1-pass


def _round_up(v, m):
    return (v + m - 1) // m * m


# ---------------------------------------------------------------------------
# Shared in-kernel helpers
# ---------------------------------------------------------------------------
def _forward_tile(x, w1, stats1_ref, w2):
    """conv1 + folded BN1 (FMA) + ReLU + conv2 on one (TM, Cin) tile; returns f32 (TM, Cout)."""
    h = jnp.dot(x.astype(MXU_DTYPE), w1, preferred_element_type=jnp.float32)
    h = jnp.maximum(h * stats1_ref[0:1, :] + stats1_ref[1:2, :], 0.0)
    return jnp.dot(h.astype(MXU_DTYPE), w2, preferred_element_type=jnp.float32)


def _accumulate_moments(v, s_ref, ss_ref, *, tm, row_start, m_true):
    """Add per-channel sum / sum-of-squares of v into (8, C) sublane-partial accumulators.

    The padded-row mask is only built on tiles that actually contain rows >= m_true; all other
    tiles accumulate with pure VALU adds (cross-sublane reduction is deferred to the wrapper).
    """
    def add(vv):
        vp = vv.reshape(tm // 8, 8, vv.shape[-1])
        s_ref[...] += jnp.sum(vp, axis=0)
        ss_ref[...] += jnp.sum(vp * vp, axis=0)

    if m_true is None:          # no row padding at all -> no mask code generated
        add(v)
        return

    @pl.when(row_start + tm <= m_true)
    def _():
        add(v)

    @pl.when(row_start + tm > m_true)
    def _():
        rows = jax.lax.broadcasted_iota(jnp.int32, (tm, 1), 0) + row_start
        add(jnp.where(rows < m_true, v, 0.0))


# ---------------------------------------------------------------------------
# Pass A: per-core partial BN1 sums over h = x @ W1
# ---------------------------------------------------------------------------
def _bn1_stats_kernel(x_ref, w1_ref, s_ref, ss_ref, *, tm, tiles_per_core, m_true):
    c = pl.program_id(0)
    i = pl.program_id(1)

    @pl.when(i == 0)
    def _():
        s_ref[...] = jnp.zeros_like(s_ref)
        ss_ref[...] = jnp.zeros_like(ss_ref)

    # Conv1d(Cin -> H, k=1) == x @ W1.  Bias omitted: cancelled by BN1 mean subtraction.
    h = jnp.dot(x_ref[...].astype(MXU_DTYPE), w1_ref[...], preferred_element_type=jnp.float32)
    _accumulate_moments(h, s_ref, ss_ref, tm=tm,
                        row_start=(c * tiles_per_core + i) * tm, m_true=m_true)


# ---------------------------------------------------------------------------
# Pass B: per-core partial BN2 sums over y = relu(BN1(x@W1)) @ W2  (no y write)
# ---------------------------------------------------------------------------
def _bn2_stats_kernel(x_ref, w1_ref, stats1_ref, w2_ref, s_ref, ss_ref, *,
                      tm, tiles_per_core, m_true):
    c = pl.program_id(0)
    i = pl.program_id(1)

    @pl.when(i == 0)
    def _():
        s_ref[...] = jnp.zeros_like(s_ref)
        ss_ref[...] = jnp.zeros_like(ss_ref)

    y = _forward_tile(x_ref[...], w1_ref[...], stats1_ref, w2_ref[...])
    _accumulate_moments(y, s_ref, ss_ref, tm=tm,
                        row_start=(c * tiles_per_core + i) * tm, m_true=m_true)


# ---------------------------------------------------------------------------
# Pass C: recompute forward + apply BN2, write exact-shape output (parallel)
# ---------------------------------------------------------------------------
def _apply_kernel(x_ref, w1_ref, stats1_ref, w2_ref, stats2_ref, o_ref):
    y = _forward_tile(x_ref[...], w1_ref[...], stats1_ref, w2_ref[...])
    o_ref[...] = y * stats2_ref[0:1, :] + stats2_ref[1:2, :]


# ---------------------------------------------------------------------------
# Wrapper
# ---------------------------------------------------------------------------
@jax.jit
def local_embedding(x, params):
    """x: (B, N, input_dim) -> (B, N, output_dim), float32 (train-mode BN semantics)."""
    w1, b1, g1, beta1, w2, b2 = params   # b1/b2 unused: cancelled by train-mode BN.
    B, N, Cin = x.shape
    H = w1.shape[1]
    Cout = w2.shape[1]
    M = B * N
    f32 = jnp.float32

    # Row tiling: TM rows per grid step, n_tiles split evenly over NCORES.
    TM = min(_TM_MAX, _round_up(M, 8))
    n_tiles = _round_up(pl.cdiv(M, TM), NCORES)
    tiles_per_core = n_tiles // NCORES
    M_p = n_tiles * TM
    m_true = None if M_p == M else M     # only emit row-mask code when row padding exists

    x2d = x.reshape(M, Cin).astype(f32)
    if M_p != M:
        x2d = jnp.pad(x2d, ((0, M_p - M), (0, 0)))   # rows only; channels stay un-padded
    w1m = w1.astype(MXU_DTYPE)
    w2m = w2.astype(MXU_DTYPE)

    x_spec = pl.BlockSpec((TM, Cin), lambda c, i: (c * tiles_per_core + i, 0))
    w1_spec = pl.BlockSpec((Cin, H), lambda c, i: (0, 0))
    acc_spec = lambda C: pl.BlockSpec((8, C), lambda c, i: (c, 0))
    stats_cp = pltpu.CompilerParams(
        dimension_semantics=("parallel", "arbitrary"), vmem_limit_bytes=_VMEM_LIMIT)

    # ---- Pass A: BN1 partial sums ------------------------------------------
    s1, ss1 = pl.pallas_call(
        functools.partial(_bn1_stats_kernel, tm=TM, tiles_per_core=tiles_per_core, m_true=m_true),
        out_shape=(jax.ShapeDtypeStruct((NCORES * 8, H), f32),
                   jax.ShapeDtypeStruct((NCORES * 8, H), f32)),
        grid=(NCORES, tiles_per_core),
        in_specs=[x_spec, w1_spec],
        out_specs=(acc_spec(H), acc_spec(H)),
        compiler_params=stats_cp,
    )(x2d, w1m)

    # Fold BN1 into one per-channel FMA (tiny (H,) math in plain jnp).
    inv_m = 1.0 / M
    mean1 = jnp.sum(s1, axis=0) * inv_m
    var1 = jnp.sum(ss1, axis=0) * inv_m - mean1 * mean1
    scale1 = g1.reshape(-1).astype(f32) * jax.lax.rsqrt(var1 + EPS)
    shift1 = beta1.reshape(-1).astype(f32) - mean1 * scale1
    stats1 = jnp.stack([scale1, shift1], axis=0)           # (2, H)

    # ---- Pass B: BN2 partial sums (no intermediate y written to HBM) --------
    s2, ss2 = pl.pallas_call(
        functools.partial(_bn2_stats_kernel, tm=TM, tiles_per_core=tiles_per_core, m_true=m_true),
        out_shape=(jax.ShapeDtypeStruct((NCORES * 8, Cout), f32),
                   jax.ShapeDtypeStruct((NCORES * 8, Cout), f32)),
        grid=(NCORES, tiles_per_core),
        in_specs=[x_spec, w1_spec,
                  pl.BlockSpec((2, H), lambda c, i: (0, 0)),
                  pl.BlockSpec((H, Cout), lambda c, i: (0, 0))],
        out_specs=(acc_spec(Cout), acc_spec(Cout)),
        compiler_params=stats_cp,
    )(x2d, w1m, stats1, w2m)

    mean2 = jnp.sum(s2, axis=0) * inv_m
    var2 = jnp.sum(ss2, axis=0) * inv_m - mean2 * mean2
    inv2 = jax.lax.rsqrt(var2 + EPS)
    stats2 = jnp.stack([inv2, -mean2 * inv2], axis=0)      # (2, Cout): scale, shift

    # ---- Pass C: recompute forward, apply BN2, exact-width output -----------
    out2d = pl.pallas_call(
        _apply_kernel,
        out_shape=jax.ShapeDtypeStruct((M_p, Cout), f32),
        grid=(n_tiles,),
        in_specs=[pl.BlockSpec((TM, Cin), lambda i: (i, 0)),
                  pl.BlockSpec((Cin, H), lambda i: (0, 0)),
                  pl.BlockSpec((2, H), lambda i: (0, 0)),
                  pl.BlockSpec((H, Cout), lambda i: (0, 0)),
                  pl.BlockSpec((2, Cout), lambda i: (0, 0))],
        out_specs=pl.BlockSpec((TM, Cout), lambda i: (i, 0)),
        compiler_params=pltpu.CompilerParams(
            dimension_semantics=("parallel",), vmem_limit_bytes=_VMEM_LIMIT),
    )(x2d, w1m, stats1, w2m, stats2)

    if M_p != M:                 # only when B*N is not a multiple of TM
        out2d = out2d[:M]
    return out2d.reshape(B, N, Cout)


def init_params(key, input_dim, hidden_dim, output_dim):
    """Deterministic synthetic parameters (shapes match the PyTorch module)."""
    k1, k2, k3, k4 = jax.random.split(key, 4)
    # Conv1d weights in PyTorch are (out, in, 1); stored pre-transposed as (in, out).
    w1 = 0.1 * jax.random.normal(k1, (input_dim, hidden_dim), jnp.float32)
    b1 = 0.01 * jax.random.normal(k2, (1, hidden_dim), jnp.float32)   # cancelled by BN1
    g1 = jnp.ones((1, hidden_dim), jnp.float32)                        # BN1 gamma
    beta1 = jnp.zeros((1, hidden_dim), jnp.float32)                    # BN1 beta
    w2 = 0.1 * jax.random.normal(k3, (hidden_dim, output_dim), jnp.float32)
    b2 = 0.01 * jax.random.normal(k4, (1, output_dim), jnp.float32)    # cancelled by BN2
    return (w1, b1, g1, beta1, w2, b2)


def _reference(x, params):
    """Pure-JAX f32 reference with the original module's math (biases included)."""
    w1, b1, g1, beta1, w2, b2 = params
    B, N, Cin = x.shape
    h = x.reshape(-1, Cin) @ w1 + b1
    mu = h.mean(0, keepdims=True)
    var = ((h - mu) ** 2).mean(0, keepdims=True)
    h = jnp.maximum((h - mu) * jax.lax.rsqrt(var + EPS) * g1 + beta1, 0.0)
    y = h @ w2 + b2
    mu = y.mean(0, keepdims=True)
    var = ((y - mu) ** 2).mean(0, keepdims=True)
    y = (y - mu) * jax.lax.rsqrt(var + EPS)
    return y.reshape(B, N, -1)


if __name__ == "__main__":
    B, N = 2, 8
    input_dim, hidden_dim, output_dim = 4, 32, 16

    key = jax.random.PRNGKey(0)
    kx, kp = jax.random.split(key)
    x = jax.random.normal(kx, (B, N, input_dim), jnp.float32)
    params = init_params(kp, input_dim, hidden_dim, output_dim)

    out = local_embedding(x, params)
    jax.block_until_ready(out)
    assert out.shape == (B, N, output_dim)

    ref = _reference(x, params)
    # Tolerance reflects bf16 MXU inputs (set MXU_DTYPE = jnp.float32 for ~1e-6 agreement).
    err = float(jnp.max(jnp.abs(out - ref)))
    assert jnp.allclose(out, ref, atol=2e-2, rtol=2e-2), err

    print("KERNEL_OK")
</pallas_src>

<mosaic_0001>
module attributes {stable_mosaic.version = 11 : i64} {
  func.func @_apply_kernel(%arg0: i32, %arg1: memref<16x4xf32, #tpu.memory_space<vmem>>, %arg2: memref<4x32xbf16, #tpu.memory_space<vmem>>, %arg3: memref<2x32xf32, #tpu.memory_space<vmem>>, %arg4: memref<32x16xbf16, #tpu.memory_space<vmem>>, %arg5: memref<2x16xf32, #tpu.memory_space<vmem>>, %arg6: memref<16x16xf32, #tpu.memory_space<vmem>>) attributes {dimension_semantics = [#tpu.dimension_semantics<parallel>], iteration_bounds = array<i64: 2>, scalar_prefetch = 0 : i64, scratch_operands = 0 : i64, tpu.core_type = #tpu.core_type<tc>, window_params = [{transform_indices = @transform_0, window_bounds = array<i64: 16, 4>}, {pipeline_mode = #tpu.pipeline_mode<synchronous>, transform_indices = @transform_1, window_bounds = array<i64: 4, 32>}, {pipeline_mode = #tpu.pipeline_mode<synchronous>, transform_indices = @transform_2, window_bounds = array<i64: 2, 32>}, {pipeline_mode = #tpu.pipeline_mode<synchronous>, transform_indices = @transform_3, window_bounds = array<i64: 32, 16>}, {pipeline_mode = #tpu.pipeline_mode<synchronous>, transform_indices = @transform_4, window_bounds = array<i64: 2, 16>}, {transform_indices = @transform_5, window_bounds = array<i64: 16, 16>}]} {
    %c0 = arith.constant 0 : index
    %c0_0 = arith.constant 0 : index
    %0 = vector.load %arg1[%c0, %c0_0] : memref<16x4xf32, #tpu.memory_space<vmem>>, vector<16x4xf32>
    %c0_1 = arith.constant 0 : index
    %c0_2 = arith.constant 0 : index
    %1 = vector.load %arg2[%c0_1, %c0_2] : memref<4x32xbf16, #tpu.memory_space<vmem>>, vector<4x32xbf16>
    %c0_3 = arith.constant 0 : index
    %c0_4 = arith.constant 0 : index
    %2 = vector.load %arg4[%c0_3, %c0_4] : memref<32x16xbf16, #tpu.memory_space<vmem>>, vector<32x16xbf16>
    %3 = arith.truncf %0 : vector<16x4xf32> to vector<16x4xbf16>
    %cst = arith.constant dense<0.000000e+00> : vector<16x32xf32>
    %4 = tpu.matmul %3, %1, %cst {dimension_numbers = #tpu.dot_dimension_numbers<[1], [0], [0], [1], [0, 0, 1, 1], [], []>} : vector<16x4xbf16>, vector<4x32xbf16>, vector<16x32xf32> -> vector<16x32xf32>
    %c0_5 = arith.constant 0 : index
    %c0_6 = arith.constant 0 : index
    %5 = vector.load %arg3[%c0_5, %c0_6] : memref<2x32xf32, #tpu.memory_space<vmem>>, vector<1x32xf32>
    %6 = vector.broadcast %5 : vector<1x32xf32> to vector<16x32xf32>
    %7 = arith.mulf %4, %6 : vector<16x32xf32>
    %c1 = arith.constant 1 : index
    %c0_7 = arith.constant 0 : index
    %8 = vector.load %arg3[%c1, %c0_7] : memref<2x32xf32, #tpu.memory_space<vmem>>, vector<1x32xf32>
    %9 = vector.broadcast %8 : vector<1x32xf32> to vector<16x32xf32>
    %10 = arith.addf %7, %9 : vector<16x32xf32>
    %cst_8 = arith.constant 0.000000e+00 : f32
    %11 = vector.broadcast %cst_8 : f32 to vector<16x32xf32>
    %12 = arith.maximumf %10, %11 : vector<16x32xf32>
    %13 = arith.truncf %12 : vector<16x32xf32> to vector<16x32xbf16>
    %cst_9 = arith.constant dense<0.000000e+00> : vector<16x16xf32>
    %14 = tpu.matmul %13, %2, %cst_9 {dimension_numbers = #tpu.dot_dimension_numbers<[1], [0], [0], [1], [0, 0, 1, 1], [], []>} : vector<16x32xbf16>, vector<32x16xbf16>, vector<16x16xf32> -> vector<16x16xf32>
    %c0_10 = arith.constant 0 : index
    %c0_11 = arith.constant 0 : index
    %15 = vector.load %arg5[%c0_10, %c0_11] : memref<2x16xf32, #tpu.memory_space<vmem>>, vector<1x16xf32>
    %16 = vector.broadcast %15 : vector<1x16xf32> to vector<16x16xf32>
    %17 = arith.mulf %14, %16 : vector<16x16xf32>
    %c1_12 = arith.constant 1 : index
    %c0_13 = arith.constant 0 : index
    %18 = vector.load %arg5[%c1_12, %c0_13] : memref<2x16xf32, #tpu.memory_space<vmem>>, vector<1x16xf32>
    %19 = vector.broadcast %18 : vector<1x16xf32> to vector<16x16xf32>
    %20 = arith.addf %17, %19 : vector<16x16xf32>
    %c0_14 = arith.constant 0 : index
    %c0_15 = arith.constant 0 : index
    %21 = vector.load %arg6[%c0_14, %c0_15] : memref<16x16xf32, #tpu.memory_space<vmem>>, vector<16x16xf32>
    tpu.vector_store %arg6[%c0_14, %c0_15], %20 {strides = array<i32>} : memref<16x16xf32, #tpu.memory_space<vmem>>, vector<16x16xf32>,
    return
  }
  func.func @transform_0(%arg0: i32) -> (i32, i32) {
    %c0_i32 = arith.constant 0 : i32
    %c0_i32_0 = arith.constant 0 : i32
    return %arg0, %c0_i32 : i32, i32
  }
  func.func @transform_1(%arg0: i32) -> (i32, i32) {
    %c0_i32 = arith.constant 0 : i32
    %c0_i32_0 = arith.constant 0 : i32
    %c0_i32_1 = arith.constant 0 : i32
    return %c0_i32, %c0_i32_0 : i32, i32
  }
  func.func @transform_2(%arg0: i32) -> (i32, i32) {
    %c0_i32 = arith.constant 0 : i32
    %c0_i32_0 = arith.constant 0 : i32
    %c0_i32_1 = arith.constant 0 : i32
    return %c0_i32, %c0_i32_0 : i32, i32
  }
  func.func @transform_3(%arg0: i32) -> (i32, i32) {
    %c0_i32 = arith.constant 0 : i32
    %c0_i32_0 = arith.constant 0 : i32
    %c0_i32_1 = arith.constant 0 : i32
    return %c0_i32, %c0_i32_0 : i32, i32
  }
  func.func @transform_4(%arg0: i32) -> (i32, i32) {
    %c0_i32 = arith.constant 0 : i32
    %c0_i32_0 = arith.constant 0 : i32
    %c0_i32_1 = arith.constant 0 : i32
    return %c0_i32, %c0_i32_0 : i32, i32
  }
  func.func @transform_5(%arg0: i32) -> (i32, i32) {
    %c0_i32 = arith.constant 0 : i32
    %c0_i32_0 = arith.constant 0 : i32
    return %arg0, %c0_i32 : i32, i32
  }
}

module attributes {stable_mosaic.version = 11 : i64} {
  func.func @_bn2_stats_kernel(%arg0: i32, %arg1: i32, %arg2: memref<16x4xf32, #tpu.memory_space<vmem>>, %arg3: memref<4x32xbf16, #tpu.memory_space<vmem>>, %arg4: memref<2x32xf32, #tpu.memory_space<vmem>>, %arg5: memref<32x16xbf16, #tpu.memory_space<vmem>>, %arg6: memref<8x16xf32, #tpu.memory_space<vmem>>, %arg7: memref<8x16xf32, #tpu.memory_space<vmem>>) attributes {dimension_semantics = [#tpu.dimension_semantics<parallel>, #tpu.dimension_semantics<arbitrary>], iteration_bounds = array<i64: 2, 1>, scalar_prefetch = 0 : i64, scratch_operands = 0 : i64, tpu.core_type = #tpu.core_type<tc>, window_params = [{transform_indices = @transform_0, window_bounds = array<i64: 16, 4>}, {pipeline_mode = #tpu.pipeline_mode<synchronous>, transform_indices = @transform_1, window_bounds = array<i64: 4, 32>}, {pipeline_mode = #tpu.pipeline_mode<synchronous>, transform_indices = @transform_2, window_bounds = array<i64: 2, 32>}, {pipeline_mode = #tpu.pipeline_mode<synchronous>, transform_indices = @transform_3, window_bounds = array<i64: 32, 16>}, {transform_indices = @transform_4, window_bounds = array<i64: 8, 16>}, {transform_indices = @transform_5, window_bounds = array<i64: 8, 16>}]} {
    %c0_i32 = arith.constant 0 : i32
    %0 = arith.cmpi eq, %arg1, %c0_i32 : i32
    %1 = arith.extui %0 : i1 to i32
    %c0_i32_0 = arith.constant 0 : i32
    %2 = arith.cmpi ne, %1, %c0_i32_0 : i32
    scf.if %2 {
      %cst_17 = arith.constant 0.000000e+00 : f32
      %29 = vector.broadcast %cst_17 : f32 to vector<8x16xf32>
      %c0_18 = arith.constant 0 : index
      %c0_19 = arith.constant 0 : index
      %30 = vector.load %arg6[%c0_18, %c0_19] : memref<8x16xf32, #tpu.memory_space<vmem>>, vector<8x16xf32>
      tpu.vector_store %arg6[%c0_18, %c0_19], %29 {strides = array<i32>} : memref<8x16xf32, #tpu.memory_space<vmem>>, vector<8x16xf32>,
      %cst_20 = arith.constant 0.000000e+00 : f32
      %31 = vector.broadcast %cst_20 : f32 to vector<8x16xf32>
      %c0_21 = arith.constant 0 : index
      %c0_22 = arith.constant 0 : index
      %32 = vector.load %arg7[%c0_21, %c0_22] : memref<8x16xf32, #tpu.memory_space<vmem>>, vector<8x16xf32>
      tpu.vector_store %arg7[%c0_21, %c0_22], %31 {strides = array<i32>} : memref<8x16xf32, #tpu.memory_space<vmem>>, vector<8x16xf32>,
    } else {
    }
    %c0 = arith.constant 0 : index
    %c0_1 = arith.constant 0 : index
    %3 = vector.load %arg2[%c0, %c0_1] : memref<16x4xf32, #tpu.memory_space<vmem>>, vector<16x4xf32>
    %c0_2 = arith.constant 0 : index
    %c0_3 = arith.constant 0 : index
    %4 = vector.load %arg3[%c0_2, %c0_3] : memref<4x32xbf16, #tpu.memory_space<vmem>>, vector<4x32xbf16>
    %c0_4 = arith.constant 0 : index
    %c0_5 = arith.constant 0 : index
    %5 = vector.load %arg5[%c0_4, %c0_5] : memref<32x16xbf16, #tpu.memory_space<vmem>>, vector<32x16xbf16>
    %6 = arith.truncf %3 : vector<16x4xf32> to vector<16x4xbf16>
    %cst = arith.constant dense<0.000000e+00> : vector<16x32xf32>
    %7 = tpu.matmul %6, %4, %cst {dimension_numbers = #tpu.dot_dimension_numbers<[1], [0], [0], [1], [0, 0, 1, 1], [], []>} : vector<16x4xbf16>, vector<4x32xbf16>, vector<16x32xf32> -> vector<16x32xf32>
    %c0_6 = arith.constant 0 : index
    %c0_7 = arith.constant 0 : index
    %8 = vector.load %arg4[%c0_6, %c0_7] : memref<2x32xf32, #tpu.memory_space<vmem>>, vector<1x32xf32>
    %9 = vector.broadcast %8 : vector<1x32xf32> to vector<16x32xf32>
    %10 = arith.mulf %7, %9 : vector<16x32xf32>
    %c1 = arith.constant 1 : index
    %c0_8 = arith.constant 0 : index
    %11 = vector.load %arg4[%c1, %c0_8] : memref<2x32xf32, #tpu.memory_space<vmem>>, vector<1x32xf32>
    %12 = vector.broadcast %11 : vector<1x32xf32> to vector<16x32xf32>
    %13 = arith.addf %10, %12 : vector<16x32xf32>
    %cst_9 = arith.constant 0.000000e+00 : f32
    %14 = vector.broadcast %cst_9 : f32 to vector<16x32xf32>
    %15 = arith.maximumf %13, %14 : vector<16x32xf32>
    %16 = arith.truncf %15 : vector<16x32xf32> to vector<16x32xbf16>
    %cst_10 = arith.constant dense<0.000000e+00> : vector<16x16xf32>
    %17 = tpu.matmul %16, %5, %cst_10 {dimension_numbers = #tpu.dot_dimension_numbers<[1], [0], [0], [1], [0, 0, 1, 1], [], []>} : vector<16x32xbf16>, vector<32x16xbf16>, vector<16x16xf32> -> vector<16x16xf32>
    %c1_i32 = arith.constant 1 : i32
    %18 = arith.muli %arg0, %c1_i32 : i32
    %19 = arith.addi %18, %arg1 : i32
    %c16_i32 = arith.constant 16 : i32
    %20 = arith.muli %19, %c16_i32 : i32
    %c16_i32_11 = arith.constant 16 : i32
    %21 = arith.addi %20, %c16_i32_11 : i32
    %c16_i32_12 = arith.constant 16 : i32
    %22 = arith.cmpi sle, %21, %c16_i32_12 : i32
    %23 = arith.extui %22 : i1 to i32
    %c0_i32_13 = arith.constant 0 : i32
    %24 = arith.cmpi ne, %23, %c0_i32_13 : i32
    scf.if %24 {
      %29 = vector.shape_cast %17 : vector<16x16xf32> to vector<2x8x16xf32>
      %c0_17 = arith.constant 0 : index
      %c0_18 = arith.constant 0 : index
      %30 = vector.load %arg6[%c0_17, %c0_18] : memref<8x16xf32, #tpu.memory_space<vmem>>, vector<8x16xf32>
      %cst_19 = arith.constant dense<0.000000e+00> : vector<8x16xf32>
      %31 = vector.multi_reduction <add>, %29, %cst_19 [0] : vector<2x8x16xf32> to vector<8x16xf32>
      %32 = arith.addf %30, %31 : vector<8x16xf32>
      %c0_20 = arith.constant 0 : index
      %c0_21 = arith.constant 0 : index
      %33 = vector.load %arg6[%c0_20, %c0_21] : memref<8x16xf32, #tpu.memory_space<vmem>>, vector<8x16xf32>
      tpu.vector_store %arg6[%c0_20, %c0_21], %32 {strides = array<i32>} : memref<8x16xf32, #tpu.memory_space<vmem>>, vector<8x16xf32>,
      %c0_22 = arith.constant 0 : index
      %c0_23 = arith.constant 0 : index
      %34 = vector.load %arg7[%c0_22, %c0_23] : memref<8x16xf32, #tpu.memory_space<vmem>>, vector<8x16xf32>
      %35 = arith.mulf %29, %29 : vector<2x8x16xf32>
      %cst_24 = arith.constant dense<0.000000e+00> : vector<8x16xf32>
      %36 = vector.multi_reduction <add>, %35, %cst_24 [0] : vector<2x8x16xf32> to vector<8x16xf32>
      %37 = arith.addf %34, %36 : vector<8x16xf32>
      %c0_25 = arith.constant 0 : index
      %c0_26 = arith.constant 0 : index
      %38 = vector.load %arg7[%c0_25, %c0_26] : memref<8x16xf32, #tpu.memory_space<vmem>>, vector<8x16xf32>
      tpu.vector_store %arg7[%c0_25, %c0_26], %37 {strides = array<i32>} : memref<8x16xf32, #tpu.memory_space<vmem>>, vector<8x16xf32>,
    } else {
    }
    %c16_i32_14 = arith.constant 16 : i32
    %25 = arith.addi %20, %c16_i32_14 : i32
    %c16_i32_15 = arith.constant 16 : i32
    %26 = arith.cmpi sgt, %25, %c16_i32_15 : i32
    %27 = arith.extui %26 : i1 to i32
    %c0_i32_16 = arith.constant 0 : i32
    %28 = arith.cmpi ne, %27, %c0_i32_16 : i32
    scf.if %28 {
      %29 = tpu.iota {dimensions = array<i32: 0>} : vector<16x1xi32>
      %30 = vector.broadcast %20 : i32 to vector<16x1xi32>
      %31 = arith.addi %29, %30 : vector<16x1xi32>
      %c16_i32_17 = arith.constant 16 : i32
      %32 = vector.broadcast %c16_i32_17 : i32 to vector<16x1xi32>
      %33 = arith.cmpi slt, %31, %32 : vector<16x1xi32>
      %cst_18 = arith.constant 0.000000e+00 : f32
      %34 = vector.shape_cast %33 : vector<16x1xi1> to vector<16x1xi1>
      %35 = vector.broadcast %34 : vector<16x1xi1> to vector<16x16xi1>
      %36 = vector.broadcast %cst_18 : f32 to vector<16x16xf32>
      %37 = arith.select %35, %17, %36 : vector<16x16xi1>, vector<16x16xf32>
      %38 = vector.shape_cast %37 : vector<16x16xf32> to vector<2x8x16xf32>
      %c0_19 = arith.constant 0 : index
      %c0_20 = arith.constant 0 : index
      %39 = vector.load %arg6[%c0_19, %c0_20] : memref<8x16xf32, #tpu.memory_space<vmem>>, vector<8x16xf32>
      %cst_21 = arith.constant dense<0.000000e+00> : vector<8x16xf32>
      %40 = vector.multi_reduction <add>, %38, %cst_21 [0] : vector<2x8x16xf32> to vector<8x16xf32>
      %41 = arith.addf %39, %40 : vector<8x16xf32>
      %c0_22 = arith.constant 0 : index
      %c0_23 = arith.constant 0 : index
      %42 = vector.load %arg6[%c0_22, %c0_23] : memref<8x16xf32, #tpu.memory_space<vmem>>, vector<8x16xf32>
      tpu.vector_store %arg6[%c0_22, %c0_23], %41 {strides = array<i32>} : memref<8x16xf32, #tpu.memory_space<vmem>>, vector<8x16xf32>,
      %c0_24 = arith.constant 0 : index
      %c0_25 = arith.constant 0 : index
      %43 = vector.load %arg7[%c0_24, %c0_25] : memref<8x16xf32, #tpu.memory_space<vmem>>, vector<8x16xf32>
      %44 = arith.mulf %38, %38 : vector<2x8x16xf32>
      %cst_26 = arith.constant dense<0.000000e+00> : vector<8x16xf32>
      %45 = vector.multi_reduction <add>, %44, %cst_26 [0] : vector<2x8x16xf32> to vector<8x16xf32>
      %46 = arith.addf %43, %45 : vector<8x16xf32>
      %c0_27 = arith.constant 0 : index
      %c0_28 = arith.constant 0 : index
      %47 = vector.load %arg7[%c0_27, %c0_28] : memref<8x16xf32, #tpu.memory_space<vmem>>, vector<8x16xf32>
      tpu.vector_store %arg7[%c0_27, %c0_28], %46 {strides = array<i32>} : memref<8x16xf32, #tpu.memory_space<vmem>>, vector<8x16xf32>,
    } else {
    }
    return
  }
  func.func @transform_0(%arg0: i32, %arg1: i32) -> (i32, i32) {
    %c1_i32 = arith.constant 1 : i32
    %0 = arith.muli %arg0, %c1_i32 : i32
    %1 = arith.addi %0, %arg1 : i32
    %c0_i32 = arith.constant 0 : i32
    %c0_i32_0 = arith.constant 0 : i32
    return %1, %c0_i32 : i32, i32
  }
  func.func @transform_1(%arg0: i32, %arg1: i32) -> (i32, i32) {
    %c0_i32 = arith.constant 0 : i32
    %c0_i32_0 = arith.constant 0 : i32
    %c0_i32_1 = arith.constant 0 : i32
    return %c0_i32, %c0_i32_0 : i32, i32
  }
  func.func @transform_2(%arg0: i32, %arg1: i32) -> (i32, i32) {
    %c0_i32 = arith.constant 0 : i32
    %c0_i32_0 = arith.constant 0 : i32
    %c0_i32_1 = arith.constant 0 : i32
    return %c0_i32, %c0_i32_0 : i32, i32
  }
  func.func @transform_3(%arg0: i32, %arg1: i32) -> (i32, i32) {
    %c0_i32 = arith.constant 0 : i32
    %c0_i32_0 = arith.constant 0 : i32
    %c0_i32_1 = arith.constant 0 : i32
    return %c0_i32, %c0_i32_0 : i32, i32
  }
  func.func @transform_4(%arg0: i32, %arg1: i32) -> (i32, i32) {
    %c0_i32 = arith.constant 0 : i32
    %c0_i32_0 = arith.constant 0 : i32
    return %arg0, %c0_i32 : i32, i32
  }
  func.func @transform_5(%arg0: i32, %arg1: i32) -> (i32, i32) {
    %c0_i32 = arith.constant 0 : i32
    %c0_i32_0 = arith.constant 0 : i32
    return %arg0, %c0_i32 : i32, i32
  }
}

module attributes {stable_mosaic.version = 11 : i64} {
  func.func @_bn1_stats_kernel(%arg0: i32, %arg1: i32, %arg2: memref<16x4xf32, #tpu.memory_space<vmem>>, %arg3: memref<4x32xbf16, #tpu.memory_space<vmem>>, %arg4: memref<8x32xf32, #tpu.memory_space<vmem>>, %arg5: memref<8x32xf32, #tpu.memory_space<vmem>>) attributes {dimension_semantics = [#tpu.dimension_semantics<parallel>, #tpu.dimension_semantics<arbitrary>], iteration_bounds = array<i64: 2, 1>, scalar_prefetch = 0 : i64, scratch_operands = 0 : i64, tpu.core_type = #tpu.core_type<tc>, window_params = [{transform_indices = @transform_0, window_bounds = array<i64: 16, 4>}, {pipeline_mode = #tpu.pipeline_mode<synchronous>, transform_indices = @transform_1, window_bounds = array<i64: 4, 32>}, {transform_indices = @transform_2, window_bounds = array<i64: 8, 32>}, {transform_indices = @transform_3, window_bounds = array<i64: 8, 32>}]} {
    %c0_i32 = arith.constant 0 : i32
    %0 = arith.cmpi eq, %arg1, %c0_i32 : i32
    %1 = arith.extui %0 : i1 to i32
    %c0_i32_0 = arith.constant 0 : i32
    %2 = arith.cmpi ne, %1, %c0_i32_0 : i32
    scf.if %2 {
      %cst_10 = arith.constant 0.000000e+00 : f32
      %18 = vector.broadcast %cst_10 : f32 to vector<8x32xf32>
      %c0_11 = arith.constant 0 : index
      %c0_12 = arith.constant 0 : index
      %19 = vector.load %arg4[%c0_11, %c0_12] : memref<8x32xf32, #tpu.memory_space<vmem>>, vector<8x32xf32>
      tpu.vector_store %arg4[%c0_11, %c0_12], %18 {strides = array<i32>} : memref<8x32xf32, #tpu.memory_space<vmem>>, vector<8x32xf32>,
      %cst_13 = arith.constant 0.000000e+00 : f32
      %20 = vector.broadcast %cst_13 : f32 to vector<8x32xf32>
      %c0_14 = arith.constant 0 : index
      %c0_15 = arith.constant 0 : index
      %21 = vector.load %arg5[%c0_14, %c0_15] : memref<8x32xf32, #tpu.memory_space<vmem>>, vector<8x32xf32>
      tpu.vector_store %arg5[%c0_14, %c0_15], %20 {strides = array<i32>} : memref<8x32xf32, #tpu.memory_space<vmem>>, vector<8x32xf32>,
    } else {
    }
    %c0 = arith.constant 0 : index
    %c0_1 = arith.constant 0 : index
    %3 = vector.load %arg2[%c0, %c0_1] : memref<16x4xf32, #tpu.memory_space<vmem>>, vector<16x4xf32>
    %4 = arith.truncf %3 : vector<16x4xf32> to vector<16x4xbf16>
    %c0_2 = arith.constant 0 : index
    %c0_3 = arith.constant 0 : index
    %5 = vector.load %arg3[%c0_2, %c0_3] : memref<4x32xbf16, #tpu.memory_space<vmem>>, vector<4x32xbf16>
    %cst = arith.constant dense<0.000000e+00> : vector<16x32xf32>
    %6 = tpu.matmul %4, %5, %cst {dimension_numbers = #tpu.dot_dimension_numbers<[1], [0], [0], [1], [0, 0, 1, 1], [], []>} : vector<16x4xbf16>, vector<4x32xbf16>, vector<16x32xf32> -> vector<16x32xf32>
    %c1_i32 = arith.constant 1 : i32
    %7 = arith.muli %arg0, %c1_i32 : i32
    %8 = arith.addi %7, %arg1 : i32
    %c16_i32 = arith.constant 16 : i32
    %9 = arith.muli %8, %c16_i32 : i32
    %c16_i32_4 = arith.constant 16 : i32
    %10 = arith.addi %9, %c16_i32_4 : i32
    %c16_i32_5 = arith.constant 16 : i32
    %11 = arith.cmpi sle, %10, %c16_i32_5 : i32
    %12 = arith.extui %11 : i1 to i32
    %c0_i32_6 = arith.constant 0 : i32
    %13 = arith.cmpi ne, %12, %c0_i32_6 : i32
    scf.if %13 {
      %18 = vector.shape_cast %6 : vector<16x32xf32> to vector<2x8x32xf32>
      %c0_10 = arith.constant 0 : index
      %c0_11 = arith.constant 0 : index
      %19 = vector.load %arg4[%c0_10, %c0_11] : memref<8x32xf32, #tpu.memory_space<vmem>>, vector<8x32xf32>
      %cst_12 = arith.constant dense<0.000000e+00> : vector<8x32xf32>
      %20 = vector.multi_reduction <add>, %18, %cst_12 [0] : vector<2x8x32xf32> to vector<8x32xf32>
      %21 = arith.addf %19, %20 : vector<8x32xf32>
      %c0_13 = arith.constant 0 : index
      %c0_14 = arith.constant 0 : index
      %22 = vector.load %arg4[%c0_13, %c0_14] : memref<8x32xf32, #tpu.memory_space<vmem>>, vector<8x32xf32>
      tpu.vector_store %arg4[%c0_13, %c0_14], %21 {strides = array<i32>} : memref<8x32xf32, #tpu.memory_space<vmem>>, vector<8x32xf32>,
      %c0_15 = arith.constant 0 : index
      %c0_16 = arith.constant 0 : index
      %23 = vector.load %arg5[%c0_15, %c0_16] : memref<8x32xf32, #tpu.memory_space<vmem>>, vector<8x32xf32>
      %24 = arith.mulf %18, %18 : vector<2x8x32xf32>
      %cst_17 = arith.constant dense<0.000000e+00> : vector<8x32xf32>
      %25 = vector.multi_reduction <add>, %24, %cst_17 [0] : vector<2x8x32xf32> to vector<8x32xf32>
      %26 = arith.addf %23, %25 : vector<8x32xf32>
      %c0_18 = arith.constant 0 : index
      %c0_19 = arith.constant 0 : index
      %27 = vector.load %arg5[%c0_18, %c0_19] : memref<8x32xf32, #tpu.memory_space<vmem>>, vector<8x32xf32>
      tpu.vector_store %arg5[%c0_18, %c0_19], %26 {strides = array<i32>} : memref<8x32xf32, #tpu.memory_space<vmem>>, vector<8x32xf32>,
    } else {
    }
    %c16_i32_7 = arith.constant 16 : i32
    %14 = arith.addi %9, %c16_i32_7 : i32
    %c16_i32_8 = arith.constant 16 : i32
    %15 = arith.cmpi sgt, %14, %c16_i32_8 : i32
    %16 = arith.extui %15 : i1 to i32
    %c0_i32_9 = arith.constant 0 : i32
    %17 = arith.cmpi ne, %16, %c0_i32_9 : i32
    scf.if %17 {
      %18 = tpu.iota {dimensions = array<i32: 0>} : vector<16x1xi32>
      %19 = vector.broadcast %9 : i32 to vector<16x1xi32>
      %20 = arith.addi %18, %19 : vector<16x1xi32>
      %c16_i32_10 = arith.constant 16 : i32
      %21 = vector.broadcast %c16_i32_10 : i32 to vector<16x1xi32>
      %22 = arith.cmpi slt, %20, %21 : vector<16x1xi32>
      %cst_11 = arith.constant 0.000000e+00 : f32
      %23 = vector.shape_cast %22 : vector<16x1xi1> to vector<16x1xi1>
      %24 = vector.broadcast %23 : vector<16x1xi1> to vector<16x32xi1>
      %25 = vector.broadcast %cst_11 : f32 to vector<16x32xf32>
      %26 = arith.select %24, %6, %25 : vector<16x32xi1>, vector<16x32xf32>
      %27 = vector.shape_cast %26 : vector<16x32xf32> to vector<2x8x32xf32>
      %c0_12 = arith.constant 0 : index
      %c0_13 = arith.constant 0 : index
      %28 = vector.load %arg4[%c0_12, %c0_13] : memref<8x32xf32, #tpu.memory_space<vmem>>, vector<8x32xf32>
      %cst_14 = arith.constant dense<0.000000e+00> : vector<8x32xf32>
      %29 = vector.multi_reduction <add>, %27, %cst_14 [0] : vector<2x8x32xf32> to vector<8x32xf32>
      %30 = arith.addf %28, %29 : vector<8x32xf32>
      %c0_15 = arith.constant 0 : index
      %c0_16 = arith.constant 0 : index
      %31 = vector.load %arg4[%c0_15, %c0_16] : memref<8x32xf32, #tpu.memory_space<vmem>>, vector<8x32xf32>
      tpu.vector_store %arg4[%c0_15, %c0_16], %30 {strides = array<i32>} : memref<8x32xf32, #tpu.memory_space<vmem>>, vector<8x32xf32>,
      %c0_17 = arith.constant 0 : index
      %c0_18 = arith.constant 0 : index
      %32 = vector.load %arg5[%c0_17, %c0_18] : memref<8x32xf32, #tpu.memory_space<vmem>>, vector<8x32xf32>
      %33 = arith.mulf %27, %27 : vector<2x8x32xf32>
      %cst_19 = arith.constant dense<0.000000e+00> : vector<8x32xf32>
      %34 = vector.multi_reduction <add>, %33, %cst_19 [0] : vector<2x8x32xf32> to vector<8x32xf32>
      %35 = arith.addf %32, %34 : vector<8x32xf32>
      %c0_20 = arith.constant 0 : index
      %c0_21 = arith.constant 0 : index
      %36 = vector.load %arg5[%c0_20, %c0_21] : memref<8x32xf32, #tpu.memory_space<vmem>>, vector<8x32xf32>
      tpu.vector_store %arg5[%c0_20, %c0_21], %35 {strides = array<i32>} : memref<8x32xf32, #tpu.memory_space<vmem>>, vector<8x32xf32>,
    } else {
    }
    return
  }
  func.func @transform_0(%arg0: i32, %arg1: i32) -> (i32, i32) {
    %c1_i32 = arith.constant 1 : i32
    %0 = arith.muli %arg0, %c1_i32 : i32
    %1 = arith.addi %0, %arg1 : i32
    %c0_i32 = arith.constant 0 : i32
    %c0_i32_0 = arith.constant 0 : i32
    return %1, %c0_i32 : i32, i32
  }
  func.func @transform_1(%arg0: i32, %arg1: i32) -> (i32, i32) {
    %c0_i32 = arith.constant 0 : i32
    %c0_i32_0 = arith.constant 0 : i32
    %c0_i32_1 = arith.constant 0 : i32
    return %c0_i32, %c0_i32_0 : i32, i32
  }
  func.func @transform_2(%arg0: i32, %arg1: i32) -> (i32, i32) {
    %c0_i32 = arith.constant 0 : i32
    %c0_i32_0 = arith.constant 0 : i32
    return %arg0, %c0_i32 : i32, i32
  }
  func.func @transform_3(%arg0: i32, %arg1: i32) -> (i32, i32) {
    %c0_i32 = arith.constant 0 : i32
    %c0_i32_0 = arith.constant 0 : i32
    return %arg0, %c0_i32 : i32, i32
  }
}

</mosaic_0001>

<bundles_post_ra>
// kernel: local_embedding.3
= control target key start
LH: loop header
LB: loop body
LE: loop exit
PB: predicated region body
PF: predicated region fallthrough
CT: control target
= control target key end

     0   :  { %s504_s12 = smov 0   ;;  %s506_s13 = smov 0   ;;  %s577_s0 = inlined_call_operand.vmem [shape: f32[32,4], index: 0, kind: input, shape index: {}]   ;;  %s578_s1 = inlined_call_operand.vmem [shape: bf16[4,32], index: 1, kind: input, shape index: {}]   ;;  %s579_s2 = inlined_call_operand.vmem [shape: f32[16,32], index: 2, kind: output, shape index: {0}]   ;;  %s580_s3 = inlined_call_operand.vmem [shape: f32[16,32], index: 3, kind: output, shape index: {1}]  }
   0x1   :  { %s508_s14 = smov 0  }
   0x2 LB: > { %s26_s15 = sadd.s32 1, %s476_s13  ;;  %p413_p0 = scmp.ge.s32.totalorder %s480_s14, 1  ;;  %s480_s14 = sphi %s508_s14, %s14_s14   ;;  %s476_s13 = sphi %s506_s13, %s582_s13   ;;  %s472_s12 = sphi %s504_s12, %s581_s12  }
   0x3   : > { %p28_p1 = scmp.ge.s32.totalorder %s26_s15, 2  ;;  %p157_p2 = scmp.lt.s32.totalorder %s480_s14, 3 }
   0x5   : > { %s584_s15 = smov (%p28_p1, %s26_s15), 0  ;;  %p158_p3 = pnand %p413_p0, %p157_p2 }
   0x6   : > { %p193_p4 = scmp.lt.s32.totalorder (!%p158_p3), %s472_s12, 1  ;;  %s414_s18 = sshll.u32 (!%p158_p3), %s472_s12, 1 }
   0x7   : > { %161 = sbr.rel (%p158_p3) target bundleno = 252 (0xfc), region = 28  ;;  %p187_p5 = scmp.lt.s32.totalorder (!%p158_p3), %s414_s18, 3 }
   0x8   : > { %s419_s4 = sshll.u32 (!%p158_p3), %s472_s12, 4 }
   0x9   : > { %s264_s5 = sadd.s32 (!%p158_p3), 16, %s419_s4 }
   0xa   : > { %p420_p6 = scmp.gt.s32.totalorder (!%p158_p3), %s264_s5, 16 }
   0xc   : > { %v212_v0 = vld [vmem:[%s578_s1] sm:$0x3]  ;;  %vm217_vm0 = vcmask 1041408   ;;  %v482_v1 = vmov 0.0   ;;  %s194_s19 = scalar_select %p193_p4, %s472_s12, 1  ;;  %vm483_vm1 = vmmov 0  }
   0xd   : > { %426 = vmatprep.subr.bf16.mxu0 %v482_v1  ;;  %v219_v2 = vsel %vm217_vm0, %v212_v0, 0  ;;  %428 = vmatprep.mubr.msk.bf16.mxu0 %vm483_vm1, %v482_v1  ;;  %vm206_vm2 = vcmask 261120   ;;  %s586_s18 = smov (!%p187_p5, %s414_s18), 3  ;;  %vm213_vm3 = vcmask 31744  }
   0xe   : > { %427 = vmatpush3.bf16.msra.mxu0 %v219_v2  ;;  %s416_s20 = sshll.u32 %s194_s19, 3  ;;  %s415_s27 = sshll.u32 %s586_s18, 3 }
   0xf   : > { %s533_s23 = scalar_lea.vmem %s579_s2, %s416_s20  ;;  %s538_s26 = scalar_lea.vmem %s580_s3, %s416_s20 }
  0x10   : > { %207 = vst.msk [vmem:[%s533_s23] sm:$0xff] %vm206_vm2, %v482_v1  ;;  %208 = vst.msk [vmem:[%s538_s26] sm:$0xff] %vm206_vm2, %v482_v1  ;;  %s190_s30 = scalar_lea.vmem %s577_s0, %s415_s27 }
  0x11   : > { %v209_v3 = vld [vmem:[%s190_s30] sm:$0xff]  ;;  %v210_v4 = vld [vmem:[%s190_s30 + $0x8] sm:$0xff] }
  0x12   : > { %v211_v5 = vpack.c.bf16 %v210_v4, %v209_v3 }
  0x14   : > { %429 = vmatmul.mubr.msk.bf16.vlgmr.msra.gmra.mxu0 %vm213_vm3, %v211_v5 }
  0xd4   : > { %v255_v6 = vpop.f32.mrf.mxu0 }
  0xd6   : > { %v430_v7 = vpop.f32.mrf.mxu0  ;;  %268 = sbr.rel (%p420_p6) target bundleno = 227 (0xe3), region = 36 }
  0xd8   : > { %v258_v8 = vpop.f32.mrf.mxu0 }
  0xda   : > { %v431_v9 = vpop.f32.mrf.mxu0 }
  0xdb   : > { %v269_v10 = vld [vmem:[%s533_s23] sm:$0xff]  ;;  %v271_v11 = vsel %vm206_vm2, %v255_v6, 0.0  ;;  %v272_v12 = vsel %vm206_vm2, %v258_v8, 0.0  ;;  %v277_v13 = vmul.f32 %v255_v6, %v255_v6  ;;  %v278_v14 = vmul.f32 %v258_v8, %v258_v8 }
  0xdc   : > { %v273_v15 = vadd.f32 %v272_v12, %v271_v11  ;;  %v276_v16 = vld [vmem:[%s538_s26] sm:$0xff] }
  0xdd   : > { %v279_v17 = vsel %vm206_vm2, %v277_v13, 0.0  ;;  %v280_v18 = vsel %vm206_vm2, %v278_v14, 0.0 }
  0xde   : > { %v274_v19 = vadd.f32 %v273_v15, %v269_v10  ;;  %v281_v20 = vadd.f32 %v280_v18, %v279_v17 }
  0xe0   : > { %275 = vst.msk [vmem:[%s533_s23] sm:$0xff] %vm206_vm2, %v274_v19  ;;  %v282_v21 = vadd.f32 %v281_v20, %v276_v16 }
  0xe2   : > { %283 = vst.msk [vmem:[%s538_s26] sm:$0xff] %vm206_vm2, %v282_v21 }
  0xe3 PF: > { %p421_p7 = scmp.le.s32.totalorder %s264_s5, 16 }
  0xe5   : > { %287 = sbr.rel (%p421_p7) target bundleno = 252 (0xfc), region = 40 }
  0xea   : > { %v288_v22 = vlaneseq  ;;  %v291_v23 = vstv %s419_s4  ;;  %v302_v32 = vld [vmem:[%s533_s23] sm:$0xff] }
  0xeb   : > { %v309_v37 = vld [vmem:[%s538_s26] sm:$0xff] }
  0xec   : > { %v289_v24 = vshrl.u32 %v288_v22, 7 }
  0xee   : > { %v290_v25 = vadd.s32 8, %v289_v24  ;;  %v292_v26 = vadd.s32 %v291_v23, %v289_v24 }
  0xf0   : > { %v293_v27 = vadd.s32 %v291_v23, %v290_v25  ;;  %vm294_vm4 = vcmp.lt.s32.totalorder %v292_v26, 16 }
  0xf1   : > { %v300_v28 = vsel %vm294_vm4, %v255_v6, 0.0 }
  0xf2   : > { %vm295_vm5 = vcmp.lt.s32.totalorder %v293_v27, 16  ;;  %v304_v29 = vsel %vm206_vm2, %v300_v28, 0.0  ;;  %v310_v30 = vmul.f32 %v300_v28, %v300_v28 }
  0xf3   : > { %v301_v31 = vsel %vm295_vm5, %v258_v8, 0.0 }
  0xf4   : > { %v305_v33 = vsel %vm206_vm2, %v301_v31, 0.0  ;;  %v311_v34 = vmul.f32 %v301_v31, %v301_v31  ;;  %v312_v35 = vsel %vm206_vm2, %v310_v30, 0.0 }
  0xf5   : > { %v306_v36 = vadd.f32 %v305_v33, %v304_v29 }
  0xf6   : > { %v313_v38 = vsel %vm206_vm2, %v311_v34, 0.0 }
  0xf7   : > { %v307_v39 = vadd.f32 %v306_v36, %v302_v32  ;;  %v314_v40 = vadd.f32 %v313_v38, %v312_v35 }
  0xf9   : > { %308 = vst.msk [vmem:[%s533_s23] sm:$0xff] %vm206_vm2, %v307_v39  ;;  %v315_v41 = vadd.f32 %v314_v40, %v309_v37 }
  0xfb   : > { %316 = vst.msk [vmem:[%s538_s26] sm:$0xff] %vm206_vm2, %v315_v41 }
  0xfc PF: > { %s14_s14 = sadd.s32 1, %s480_s14   ;;  %s581_s12 = smov %s476_s13 }
  0xfd   : > { %p11_p8 = scmp.ge.s32.totalorder %s14_s14, 4   ;;  %s582_s13 = smov %s584_s15 }
  0xff   :  { %13 = sbr.rel (!%p11_p8) target bundleno = 2 (0x2), region = 82 }

// kernel: local_embedding.5
= control target key start
LH: loop header
LB: loop body
LE: loop exit
PB: predicated region body
PF: predicated region fallthrough
CT: control target
= control target key end

     0   :  { %s523_s18 = smov 0   ;;  %s568_s0 = inlined_call_operand.vmem [shape: f32[32,4], index: 0, kind: input, shape index: {}]   ;;  %s569_s1 = inlined_call_operand.vmem [shape: bf16[4,32], index: 1, kind: input, shape index: {}]   ;;  %s570_s2 = inlined_call_operand.vmem [shape: f32[2,32], index: 2, kind: input, shape index: {}]   ;;  %s571_s3 = inlined_call_operand.vmem [shape: bf16[32,16], index: 3, kind: input, shape index: {}]   ;;  %s572_s4 = inlined_call_operand.vmem [shape: f32[2,16], index: 4, kind: input, shape index: {}]   ;;  %s573_s5 = inlined_call_operand.vmem [shape: f32[32,16], index: 5, kind: output, shape index: {}]  }
   0x1 LB: > { %s433_s19 = sadd.s32 4294967295, %s489_s18   ;;  %p437_p0 = scmp.ge.s32.totalorder %s489_s18, 1  ;;  %s489_s18 = sphi %s523_s18, %s15_s18  }
   0x2   : > { %p188_p1 = scmp.lt.s32.totalorder %s489_s18, 3 }
   0x4   : > { %p189_p2 = pnand %p437_p0, %p188_p1 }
   0x5   : > { %s438_s22 = sshll.u32 (!%p189_p2), %s433_s19, 1 }
   0x6   : > { %192 = sbr.rel (%p189_p2) target bundleno = 424 (0x1a8), region = 40  ;;  %p217_p3 = scmp.lt.s32.totalorder (!%p189_p2), %s438_s22, 3 }
   0xb   : > { %v231_v0 = vld [vmem:[%s569_s1] sm:$0x3]  ;;  %vm241_vm0 = vcmask 1041408   ;;  %v491_v1 = vmov 0.0   ;;  %vm492_vm1 = vmmov 0   ;;  %s575_s22 = smov (!%p217_p3, %s438_s22), 3 }
   0xc   : > { %457 = vmatprep.subr.bf16.mxu0 %v491_v1  ;;  %v243_v2 = vsel %vm241_vm0, %v231_v0, 0  ;;  %459 = vmatprep.mubr.msk.bf16.mxu0 %vm492_vm1, %v491_v1  ;;  %s439_s23 = sshll.u32 %s575_s22, 3  ;;  %vm237_vm2 = vcmask 31744   ;;  %v481_v6 = vld [vmem:[%s571_s3 + $0x8] sm:$0xff]   ;;  %v482_v7 = vld [vmem:[%s571_s3] sm:$0xff]   ;;  %vm315_vm3 = vcmask 261120  }
   0xd   : > { %458 = vmatpush3.bf16.msra.mxu0 %v243_v2  ;;  %463 = vmatprep.subr.bf16.mxu1 %v491_v1  ;;  %s220_s26 = scalar_lea.vmem %s568_s0, %s439_s23  ;;  %v443_v8 = vld [vmem:[%s570_s2] ss:$0 sm:$0xff]  ;;  %v444_v11 = vld [vmem:[%s570_s2 + $0x1] ss:$0 sm:$0xff]  ;;  %s226_s16 = scalar_lea.vmem %s573_s5, %s439_s23  ;;  %vm374_vm4 = vcmask 130048  }
   0xe   : > { %467 = vmatprep.mubr.msk.bf16.mxu1 %vm492_vm1, %v491_v1  ;;  %v229_v3 = vld [vmem:[%s220_s26] sm:$0xff]  ;;  %v230_v4 = vld [vmem:[%s220_s26 + $0x8] sm:$0xff]  ;;  %464 = vmatpush3.bf16.msra.mxu1 %v481_v6 }
   0xf   : > { %v236_v5 = vpack.c.bf16 %v230_v4, %v229_v3  ;;  %465 = vmatprep.subr.bf16.mxu1 %v491_v1  ;;  %v448_v21 = vld [vmem:[%s572_s4] ss:$0 sm:$0xff]  ;;  %v449_v23 = vld [vmem:[%s572_s4 + $0x1] ss:$0 sm:$0xff] }
  0x11   : > { %460 = vmatmul.mubr.msk.bf16.vlgmr.msra.gmra.mxu0 %vm237_vm2, %v236_v5 }
  0x12   : > { %466 = vmatpush3.bf16.msra.mxu1 %v482_v7 }
  0xd1   : > { %v279_v9 = vpop.f32.mrf.mxu0 }
  0xd2   : > { %v291_v10 = vmul.f32 %v443_v8, %v279_v9 }
  0xd3   : > { %v461_v12 = vpop.f32.mrf.mxu0 }
  0xd4   : > { %v298_v14 = vadd.f32 %v444_v11, %v291_v10 }
  0xd5   : > { %v282_v13 = vpop.f32.mrf.mxu0 }
  0xd6   : > { %v292_v15 = vmul.f32 %v443_v8, %v282_v13  ;;  %v300_v18 = vmax.f32 %v298_v14, 0.0 }
  0xd7   : > { %v462_v16 = vpop.f32.mrf.mxu0 }
  0xd8   : > { %v299_v17 = vadd.f32 %v444_v11, %v292_v15 }
  0xda   : > { %v301_v19 = vmax.f32 %v299_v17, 0.0 }
  0xdc   : > { %v302_v20 = vpack.c.bf16 %v301_v19, %v300_v18 }
  0xde   : > { %468 = vmatmul.mubr.msk.bf16.vlgmr.msra.gmra.mxu1 %vm315_vm3, %v302_v20 }
 0x19e   : > { %v353_v22 = vpop.f32.mrf.mxu1 }
 0x19f   : > { %v365_v24 = vmul.f32 %v448_v21, %v353_v22 }
 0x1a0   : > { %v469_v25 = vpop.f32.mrf.mxu1 }
 0x1a1   : > { %v372_v26 = vadd.f32 %v449_v23, %v365_v24 }
 0x1a2   : > { %v356_v27 = vpop.f32.mrf.mxu1 }
 0x1a3   : > { %375 = vst.msk [vmem:[%s226_s16] sm:$0xff] %vm374_vm4, %v372_v26  ;;  %v366_v28 = vmul.f32 %v448_v21, %v356_v27 }
 0x1a4   : > { %v470_v29 = vpop.f32.mrf.mxu1 }
 0x1a5   : > { %v373_v30 = vadd.f32 %v449_v23, %v366_v28 }
 0x1a7   : > { %376 = vst.msk [vmem:[%s226_s16 + $0x8] sm:$0xff] %vm374_vm4, %v373_v30 }
 0x1a8 PF: > { %s15_s18 = sadd.s32 1, %s489_s18  }
 0x1a9   : > { %p12_p4 = scmp.ge.s32.totalorder %s15_s18, 4  }
 0x1ab   :  { %14 = sbr.rel (!%p12_p4) target bundleno = 1 (0x1), region = 70 }

// kernel: local_embedding.4
= control target key start
LH: loop header
LB: loop body
LE: loop exit
PB: predicated region body
PF: predicated region fallthrough
CT: control target
= control target key end

     0   :  { %s664_s18 = smov 0   ;;  %s666_s19 = smov 0   ;;  %s749_s0 = inlined_call_operand.vmem [shape: f32[32,4], index: 0, kind: input, shape index: {}]   ;;  %s750_s1 = inlined_call_operand.vmem [shape: bf16[4,32], index: 1, kind: input, shape index: {}]   ;;  %s751_s2 = inlined_call_operand.vmem [shape: f32[2,32], index: 2, kind: input, shape index: {}]   ;;  %s752_s3 = inlined_call_operand.vmem [shape: bf16[32,16], index: 3, kind: input, shape index: {}]   ;;  %s753_s4 = inlined_call_operand.vmem [shape: f32[16,16], index: 4, kind: output, shape index: {0}]   ;;  %s754_s5 = inlined_call_operand.vmem [shape: f32[16,16], index: 5, kind: output, shape index: {1}]  }
   0x1   :  { %s668_s20 = smov 0  }
   0x2 LB: > { %s28_s21 = sadd.s32 1, %s626_s19  ;;  %p545_p0 = scmp.ge.s32.totalorder %s630_s20, 1  ;;  %s630_s20 = sphi %s668_s20, %s16_s20   ;;  %s626_s19 = sphi %s666_s19, %s756_s19   ;;  %s622_s18 = sphi %s664_s18, %s755_s18  }
   0x3   : > { %p30_p1 = scmp.ge.s32.totalorder %s28_s21, 2  ;;  %p207_p2 = scmp.lt.s32.totalorder %s630_s20, 3 }
   0x5   : > { %s758_s21 = smov (%p30_p1, %s28_s21), 0  ;;  %p208_p3 = pnand %p545_p0, %p207_p2 }
   0x6   : > { %p247_p4 = scmp.lt.s32.totalorder (!%p208_p3), %s622_s18, 1  ;;  %s546_s24 = sshll.u32 (!%p208_p3), %s622_s18, 1 }
   0x7   : > { %211 = sbr.rel (%p208_p3) target bundleno = 457 (0x1c9), region = 36  ;;  %p241_p5 = scmp.lt.s32.totalorder (!%p208_p3), %s546_s24, 3 }
   0xc   : > { %v265_v0 = vld [vmem:[%s750_s1] sm:$0x3]  ;;  %vm275_vm0 = vcmask 1041408   ;;  %v632_v1 = vmov 0.0   ;;  %s248_s25 = scalar_select %p247_p4, %s622_s18, 1  ;;  %vm633_vm1 = vmmov 0  }
   0xd   : > { %566 = vmatprep.subr.bf16.mxu0 %v632_v1  ;;  %v277_v2 = vsel %vm275_vm0, %v265_v0, 0  ;;  %572 = vmatprep.subr.bf16.mxu1 %v632_v1  ;;  %vm260_vm2 = vcmask 130048   ;;  %s760_s24 = smov (!%p241_p5, %s546_s24), 3  ;;  %vm271_vm3 = vcmask 31744   ;;  %v606_v6 = vld [vmem:[%s752_s3 + $0x8] sm:$0xff]   ;;  %v607_v7 = vld [vmem:[%s752_s3] sm:$0xff]  }
   0xe   : > { %567 = vmatpush3.bf16.msra.mxu0 %v277_v2  ;;  %568 = vmatprep.mubr.msk.bf16.mxu0 %vm633_vm1, %v632_v1  ;;  %s548_s26 = sshll.u32 %s248_s25, 3  ;;  %s547_s8 = sshll.u32 %s760_s24, 3  ;;  %v551_v8 = vld [vmem:[%s751_s2] ss:$0 sm:$0xff]  ;;  %v552_v11 = vld [vmem:[%s751_s2 + $0x1] ss:$0 sm:$0xff] }
   0xf   : > { %576 = vmatprep.mubr.msk.bf16.mxu1 %vm633_vm1, %v632_v1  ;;  %s693_s29 = scalar_lea.vmem %s753_s4, %s548_s26  ;;  %s698_s7 = scalar_lea.vmem %s754_s5, %s548_s26  ;;  %573 = vmatpush3.bf16.msra.mxu1 %v606_v6  ;;  %vm349_vm4 = vcmask 261120  }
  0x10   : > { %261 = vst.msk [vmem:[%s693_s29] sm:$0xff] %vm260_vm2, %v632_v1  ;;  %262 = vst.msk [vmem:[%s698_s7] sm:$0xff] %vm260_vm2, %v632_v1  ;;  %s244_s11 = scalar_lea.vmem %s749_s0, %s547_s8  ;;  %574 = vmatprep.subr.bf16.mxu1 %v632_v1  ;;  %s556_s24 = sshll.u32 %s622_s18, 4 }
  0x11   : > { %v263_v3 = vld [vmem:[%s244_s11] sm:$0xff]  ;;  %v264_v4 = vld [vmem:[%s244_s11 + $0x8] sm:$0xff]  ;;  %s396_s25 = sadd.s32 16, %s556_s24 }
  0x12   : > { %v270_v5 = vpack.c.bf16 %v264_v4, %v263_v3  ;;  %p557_p6 = scmp.gt.s32.totalorder %s396_s25, 16 }
  0x13   : > { %575 = vmatpush3.bf16.msra.mxu1 %v607_v7 }
  0x14   : > { %569 = vmatmul.mubr.msk.bf16.vlgmr.msra.gmra.mxu0 %vm271_vm3, %v270_v5 }
  0xd4   : > { %v313_v9 = vpop.f32.mrf.mxu0 }
  0xd5   : > { %v325_v10 = vmul.f32 %v551_v8, %v313_v9 }
  0xd6   : > { %v570_v12 = vpop.f32.mrf.mxu0 }
  0xd7   : > { %v332_v14 = vadd.f32 %v552_v11, %v325_v10 }
  0xd8   : > { %v316_v13 = vpop.f32.mrf.mxu0 }
  0xd9   : > { %v326_v15 = vmul.f32 %v551_v8, %v316_v13  ;;  %v334_v18 = vmax.f32 %v332_v14, 0.0 }
  0xda   : > { %v571_v16 = vpop.f32.mrf.mxu0 }
  0xdb   : > { %v333_v17 = vadd.f32 %v552_v11, %v326_v15 }
  0xdd   : > { %v335_v19 = vmax.f32 %v333_v17, 0.0 }
  0xdf   : > { %v336_v20 = vpack.c.bf16 %v335_v19, %v334_v18 }
  0xe1   : > { %577 = vmatmul.mubr.msk.bf16.vlgmr.msra.gmra.mxu1 %vm349_vm4, %v336_v20 }
 0x1a1   : > { %v387_v21 = vpop.f32.mrf.mxu1 }
 0x1a3   : > { %v578_v22 = vpop.f32.mrf.mxu1  ;;  %400 = sbr.rel (%p557_p6) target bundleno = 432 (0x1b0), region = 44 }
 0x1a5   : > { %v390_v23 = vpop.f32.mrf.mxu1 }
 0x1a7   : > { %v579_v24 = vpop.f32.mrf.mxu1 }
 0x1a8   : > { %v401_v25 = vld [vmem:[%s693_s29] sm:$0xff]  ;;  %v403_v26 = vsel %vm260_vm2, %v387_v21, 0.0  ;;  %v404_v27 = vsel %vm260_vm2, %v390_v23, 0.0  ;;  %v409_v28 = vmul.f32 %v387_v21, %v387_v21  ;;  %v410_v29 = vmul.f32 %v390_v23, %v390_v23 }
 0x1a9   : > { %v405_v30 = vadd.f32 %v404_v27, %v403_v26  ;;  %v408_v31 = vld [vmem:[%s698_s7] sm:$0xff] }
 0x1aa   : > { %v411_v32 = vsel %vm260_vm2, %v409_v28, 0.0  ;;  %v412_v33 = vsel %vm260_vm2, %v410_v29, 0.0 }
 0x1ab   : > { %v406_v34 = vadd.f32 %v405_v30, %v401_v25  ;;  %v413_v35 = vadd.f32 %v412_v33, %v411_v32 }
 0x1ad   : > { %407 = vst.msk [vmem:[%s693_s29] sm:$0xff] %vm260_vm2, %v406_v34  ;;  %v414_v36 = vadd.f32 %v413_v35, %v408_v31 }
 0x1af   : > { %415 = vst.msk [vmem:[%s698_s7] sm:$0xff] %vm260_vm2, %v414_v36 }
 0x1b0 PF: > { %p558_p7 = scmp.le.s32.totalorder %s396_s25, 16 }
 0x1b2   : > { %419 = sbr.rel (%p558_p7) target bundleno = 457 (0x1c9), region = 48 }
 0x1b7   : > { %v420_v37 = vlaneseq  ;;  %v423_v38 = vstv %s556_s24  ;;  %v434_v47 = vld [vmem:[%s693_s29] sm:$0xff] }
 0x1b8   : > { %v441_v52 = vld [vmem:[%s698_s7] sm:$0xff] }
 0x1b9   : > { %v421_v39 = vshrl.u32 %v420_v37, 7 }
 0x1bb   : > { %v422_v40 = vadd.s32 8, %v421_v39  ;;  %v424_v41 = vadd.s32 %v423_v38, %v421_v39 }
 0x1bd   : > { %v425_v42 = vadd.s32 %v423_v38, %v422_v40  ;;  %vm426_vm5 = vcmp.lt.s32.totalorder %v424_v41, 16 }
 0x1be   : > { %v432_v43 = vsel %vm426_vm5, %v387_v21, 0.0 }
 0x1bf   : > { %vm427_vm6 = vcmp.lt.s32.totalorder %v425_v42, 16  ;;  %v436_v44 = vsel %vm260_vm2, %v432_v43, 0.0  ;;  %v442_v45 = vmul.f32 %v432_v43, %v432_v43 }
 0x1c0   : > { %v433_v46 = vsel %vm427_vm6, %v390_v23, 0.0 }
 0x1c1   : > { %v437_v48 = vsel %vm260_vm2, %v433_v46, 0.0  ;;  %v443_v49 = vmul.f32 %v433_v46, %v433_v46  ;;  %v444_v50 = vsel %vm260_vm2, %v442_v45, 0.0 }
 0x1c2   : > { %v438_v51 = vadd.f32 %v437_v48, %v436_v44 }
 0x1c3   : > { %v445_v53 = vsel %vm260_vm2, %v443_v49, 0.0 }
 0x1c4   : > { %v439_v54 = vadd.f32 %v438_v51, %v434_v47  ;;  %v446_v55 = vadd.f32 %v445_v53, %v444_v50 }
 0x1c6   : > { %440 = vst.msk [vmem:[%s693_s29] sm:$0xff] %vm260_vm2, %v439_v54  ;;  %v447_v56 = vadd.f32 %v446_v55, %v441_v52 }
 0x1c8   : > { %448 = vst.msk [vmem:[%s698_s7] sm:$0xff] %vm260_vm2, %v447_v56 }
 0x1c9 PF: > { %s16_s20 = sadd.s32 1, %s630_s20   ;;  %s755_s18 = smov %s626_s19 }
 0x1ca   : > { %p13_p8 = scmp.ge.s32.totalorder %s16_s20, 4   ;;  %s756_s19 = smov %s758_s21 }
 0x1cc   :  { %15 = sbr.rel (!%p13_p8) target bundleno = 2 (0x2), region = 90 }

</bundles_post_ra>
